<compile_context>
chip_gen: v5e
topology: v5e:2x2
jax: 0.10.0
libtpu: 0.0.40
codegen_flags: <defaults>
</compile_context>

<pallas_src>
import functools

import jax
import jax.numpy as jnp
from jax.experimental import pallas as pl
from jax.experimental.pallas import tpu as pltpu


def _ss2d_kernel(x_ref, wf_ref, b_ref, wo_ref, o_ref, *, H, W, ksize, pad,
                 compute_dtype):
    # x_ref:  (Bt, C, Lflat)       channel-major input; lane (pad + r*W + w') holds
    #                              the H-zero-padded row r, column w'; `pad` zero
    #                              lanes on each end keep every tap slice in-bounds.
    # wf_ref: (D, ksize*ksize*C)   fused in_proj x depthwise-conv weight
    # b_ref:  (D, 1)               depthwise conv bias (f32)
    # wo_ref: (d_model, D)         out_proj weight
    # o_ref:  (Bt, d_model, H*W)   channel-major output (H*W lanes -> dense stores)
    Bt, C, _ = x_ref.shape
    HW = H * W

    # Hoisted horizontal-halo masks (depend only on kw and the lane position w).
    wpos = jax.lax.broadcasted_iota(jnp.int32, (C, HW), 1) % W
    kw_mask = []
    for kw in range(ksize):
        lo, hi = pad - kw, W + pad - kw
        m = None
        if lo > 0:
            m = wpos >= lo
        if hi < W:
            m = (wpos < hi) if m is None else jnp.logical_and(m, wpos < hi)
        kw_mask.append(m)

    wf = wf_ref[...]
    wo = wo_ref[...]
    bias = b_ref[...]

    for b in range(Bt):                                  # static, small unroll
        xb = x_ref[b]                                    # (C, Lflat) f32

        # im2col: 9 static lane-shifted views stacked along the contraction axis.
        pieces = []
        for kh in range(ksize):
            for kw in range(ksize):
                off = kh * W + kw
                p = xb[:, off:off + HW]                  # (C, HW)
                if kw_mask[kw] is not None:
                    p = jnp.where(kw_mask[kw], p, 0.0)   # zero horizontal halo
                pieces.append(p.astype(compute_dtype))
        im2col = jnp.concatenate(pieces, axis=0)         # (ksize*ksize*C, HW)

        # in_proj + depthwise conv as a single MXU matmul (K = ksize*ksize*C).
        u = jnp.dot(wf, im2col, preferred_element_type=jnp.float32)   # (D, HW) f32
        u = u + bias

        # SiLU: exp and approximate reciprocal both run on the EUP slot.
        act = u * pl.reciprocal(1.0 + jnp.exp(-u), approx=True)

        # out_proj: N = H*W lanes -> lane-dense result, unmasked stores, dense DMA.
        y = jnp.dot(wo, act.astype(compute_dtype),
                    preferred_element_type=jnp.float32)               # (d_model, HW)
        o_ref[b] = y.astype(o_ref.dtype)
    # dropout p=0.0 -> identity; the z branch of in_proj never reaches the output.


def ss2d_forward(x, w_in, w_conv, b_conv, w_out, *, batch_block=None,
                 compute_dtype=jnp.bfloat16):
    """SS2D.forward.

    x:      (B, H, W, d_model)   NHWC input
    w_in:   (2*d_inner, d_model) in_proj weight (bias=False)
    w_conv: (d_inner, 1, k, k)   depthwise Conv2d weight (groups=d_inner)
    b_conv: (d_inner,)           depthwise Conv2d bias
    w_out:  (d_model, d_inner)   out_proj weight (bias=False)
    returns (B, H, W, d_model)
    """
    B, H, W, C = x.shape
    d_inner = w_conv.shape[0]
    ksize = w_conv.shape[2]
    pad = (ksize - 1) // 2
    d_model = w_out.shape[0]
    HW = H * W

    assert ksize % 2 == 1, "kernel assumes odd d_conv with 'same' padding"
    assert w_conv.shape == (d_inner, 1, ksize, ksize)
    assert w_in.shape == (2 * d_inner, C)
    assert w_out.shape == (d_model, d_inner)

    if batch_block is None:
        # >= 2 grid steps so both v7x TensorCores get work; on single-TC v5e/v6e
        # pass batch_block=B to amortize the ~0.35 us/step pipeline overhead.
        batch_block = B // 2 if (B % 2 == 0 and B > 1) else 1
    assert B % batch_block == 0

    # ---- parameter plumbing (tiny, fuses under jit) ----
    w_in_x = w_in[:d_inner, :]                              # x half; z half is dead
    w_dw = w_conv.reshape(d_inner, ksize * ksize)           # (D, 9)
    # fused weight: wf[d, tap*C + c] = w_in_x[d, c] * w_dw[d, tap]
    wf = (w_dw[:, :, None] * w_in_x[:, None, :]).reshape(d_inner, ksize * ksize * C)
    wf = wf.astype(compute_dtype)
    wo = w_out.astype(compute_dtype)
    bias = b_conv.reshape(d_inner, 1).astype(jnp.float32)

    # ---- input layout: channel-major, H zero-padded, flat spatial axis with a
    #      `pad`-lane halo on each end so all taps are in-bounds lane slices ----
    Hp = H + 2 * pad
    Lflat = Hp * W + 2 * pad
    x_cm = jnp.transpose(x, (0, 3, 1, 2)).astype(jnp.float32)        # (B, C, H, W)
    x_cm = jnp.pad(x_cm, ((0, 0), (0, 0), (pad, pad), (0, 0)))       # (B, C, Hp, W)
    x_cm = x_cm.reshape(B, C, Hp * W)
    x_cm = jnp.pad(x_cm, ((0, 0), (0, 0), (pad, pad)))               # (B, C, Lflat)

    kernel = functools.partial(_ss2d_kernel, H=H, W=W, ksize=ksize, pad=pad,
                               compute_dtype=compute_dtype)

    kk = ksize * ksize
    wbytes = jnp.dtype(compute_dtype).itemsize
    flops = 2 * B * HW * (d_inner * kk * C + d_model * d_inner)
    bytes_accessed = (4 * B * C * Lflat + 4 * B * d_model * HW
                      + wbytes * (d_inner * kk * C + d_model * d_inner)
                      + 4 * d_inner)

    out_cm = pl.pallas_call(
        kernel,
        out_shape=jax.ShapeDtypeStruct((B, d_model, HW), x.dtype),
        grid=(B // batch_block,),
        in_specs=[
            pl.BlockSpec((batch_block, C, Lflat), lambda i: (i, 0, 0)),
            pl.BlockSpec((d_inner, kk * C), lambda i: (0, 0)),
            pl.BlockSpec((d_inner, 1), lambda i: (0, 0)),
            pl.BlockSpec((d_model, d_inner), lambda i: (0, 0)),
        ],
        out_specs=pl.BlockSpec((batch_block, d_model, HW), lambda i: (i, 0, 0)),
        compiler_params=pltpu.CompilerParams(dimension_semantics=("parallel",)),
        cost_estimate=pl.CostEstimate(flops=flops,
                                      transcendentals=B * HW * d_inner,
                                      bytes_accessed=int(bytes_accessed)),
    )(x_cm, wf, bias, wo)

    # channel-major -> NHWC (layout plumbing outside the kernel).
    return jnp.transpose(out_cm, (0, 2, 1)).reshape(B, H, W, d_model)


if __name__ == "__main__":
    # Shapes consistent with the module: d_model=32 -> d_inner=64, 3x3 depthwise conv.
    B, H, W = 2, 16, 16
    d_model, d_conv, expand = 32, 3, 2
    d_inner = expand * d_model

    key = jax.random.PRNGKey(0)
    kx, k1, k2, k3, k4 = jax.random.split(key, 5)
    x = jax.random.normal(kx, (B, H, W, d_model), dtype=jnp.float32)
    w_in = jax.random.normal(k1, (2 * d_inner, d_model), dtype=jnp.float32) * 0.1
    w_conv = jax.random.normal(k2, (d_inner, 1, d_conv, d_conv), dtype=jnp.float32) * 0.1
    b_conv = jax.random.normal(k3, (d_inner,), dtype=jnp.float32) * 0.1
    w_out = jax.random.normal(k4, (d_model, d_inner), dtype=jnp.float32) * 0.1

    # Pure-JAX reference mirroring the PyTorch forward exactly.
    xz = jnp.einsum("bhwc,oc->bhwo", x, w_in)            # in_proj (bias=False)
    xbr = xz[..., :d_inner]                              # chunk -> x branch (z unused)
    xb_nchw = jnp.transpose(xbr, (0, 3, 1, 2))
    conv = jax.lax.conv_general_dilated(
        xb_nchw, w_conv,
        window_strides=(1, 1),
        padding=((1, 1), (1, 1)),
        dimension_numbers=("NCHW", "OIHW", "NCHW"),
        feature_group_count=d_inner,
    ) + b_conv.reshape(1, d_inner, 1, 1)
    act = jax.nn.silu(conv)
    act_nhwc = jnp.transpose(act, (0, 2, 3, 1))
    ref = jnp.einsum("bhwd,od->bhwo", act_nhwc, w_out)   # out_proj (bias=False)

    # f32-MXU path (tight check of the fused im2col math; approx EUP recip in SiLU).
    out_f32 = jax.jit(functools.partial(ss2d_forward, compute_dtype=jnp.float32))(
        x, w_in, w_conv, b_conv, w_out)
    out_f32 = jax.block_until_ready(out_f32)
    assert out_f32.shape == (B, H, W, d_model), out_f32.shape
    err32 = float(jnp.max(jnp.abs(out_f32 - ref)))
    assert jnp.allclose(out_f32, ref, atol=1e-2, rtol=1e-2), err32

    # Default bf16-MXU path (f32 accumulation): looser tolerance from operand rounding.
    out_bf16 = jax.jit(ss2d_forward)(x, w_in, w_conv, b_conv, w_out)
    out_bf16 = jax.block_until_ready(out_bf16)
    assert out_bf16.shape == (B, H, W, d_model), out_bf16.shape
    err16 = float(jnp.max(jnp.abs(out_bf16 - ref)))
    assert jnp.allclose(out_bf16, ref, atol=8e-2, rtol=8e-2), err16

    print("KERNEL_OK")
</pallas_src>

<mosaic_0001>
module attributes {stable_mosaic.version = 11 : i64} {
  func.func @_ss2d_kernel(%arg0: i32, %arg1: memref<1x32x290xf32, #tpu.memory_space<vmem>>, %arg2: memref<64x288xf32, #tpu.memory_space<vmem>>, %arg3: memref<64x1xf32, #tpu.memory_space<vmem>>, %arg4: memref<32x64xf32, #tpu.memory_space<vmem>>, %arg5: memref<1x32x256xf32, #tpu.memory_space<vmem>>) attributes {dimension_semantics = [#tpu.dimension_semantics<parallel>], iteration_bounds = array<i64: 2>, scalar_prefetch = 0 : i64, scratch_operands = 0 : i64, tpu.core_type = #tpu.core_type<tc>, window_params = [{transform_indices = @transform_0, window_bounds = array<i64: 1, 32, 290>}, {pipeline_mode = #tpu.pipeline_mode<synchronous>, transform_indices = @transform_1, window_bounds = array<i64: 64, 288>}, {pipeline_mode = #tpu.pipeline_mode<synchronous>, transform_indices = @transform_2, window_bounds = array<i64: 64, 1>}, {pipeline_mode = #tpu.pipeline_mode<synchronous>, transform_indices = @transform_3, window_bounds = array<i64: 32, 64>}, {transform_indices = @transform_4, window_bounds = array<i64: 1, 32, 256>}]} {
    %0 = tpu.iota {dimensions = array<i32: 1>} : vector<32x256xi32>
    %c16_i32 = arith.constant 16 : i32
    %c0_i32 = arith.constant 0 : i32
    %1 = arith.cmpi eq, %c16_i32, %c0_i32 : i32
    %c1_i32 = arith.constant 1 : i32
    %2 = arith.select %1, %c1_i32, %c16_i32 : i32
    %3 = vector.broadcast %2 : i32 to vector<32x256xi32>
    %4 = arith.remsi %0, %3 : vector<32x256xi32>
    %c0_i32_0 = arith.constant 0 : i32
    %5 = vector.broadcast %c0_i32_0 : i32 to vector<32x256xi32>
    %6 = arith.cmpi ne, %4, %5 : vector<32x256xi32>
    %c0_i32_1 = arith.constant 0 : i32
    %7 = vector.broadcast %c0_i32_1 : i32 to vector<32x256xi32>
    %8 = arith.cmpi slt, %4, %7 : vector<32x256xi32>
    %c0_i32_2 = arith.constant 0 : i32
    %9 = arith.cmpi slt, %2, %c0_i32_2 : i32
    %10 = vector.broadcast %9 : i1 to vector<32x256xi1>
    %11 = vector.broadcast %10 : vector<32x256xi1> to vector<32x256xi1>
    %12 = arith.xori %8, %11 : vector<32x256xi1>
    %13 = arith.andi %12, %6 : vector<32x256xi1>
    %14 = vector.broadcast %2 : i32 to vector<32x256xi32>
    %15 = arith.addi %4, %14 : vector<32x256xi32>
    %16 = arith.select %13, %15, %4 : vector<32x256xi1>, vector<32x256xi32>
    %c1_i32_3 = arith.constant 1 : i32
    %17 = vector.broadcast %c1_i32_3 : i32 to vector<32x256xi32>
    %18 = arith.cmpi sge, %16, %17 : vector<32x256xi32>
    %c15_i32 = arith.constant 15 : i32
    %19 = vector.broadcast %c15_i32 : i32 to vector<32x256xi32>
    %20 = arith.cmpi slt, %16, %19 : vector<32x256xi32>
    %c0 = arith.constant 0 : index
    %c0_4 = arith.constant 0 : index
    %21 = vector.load %arg2[%c0, %c0_4] : memref<64x288xf32, #tpu.memory_space<vmem>>, vector<64x288xf32>
    %c0_5 = arith.constant 0 : index
    %c0_6 = arith.constant 0 : index
    %22 = vector.load %arg4[%c0_5, %c0_6] : memref<32x64xf32, #tpu.memory_space<vmem>>, vector<32x64xf32>
    %c0_7 = arith.constant 0 : index
    %c0_8 = arith.constant 0 : index
    %23 = vector.load %arg3[%c0_7, %c0_8] : memref<64x1xf32, #tpu.memory_space<vmem>>, vector<64x1xf32>
    %c0_9 = arith.constant 0 : index
    %c0_10 = arith.constant 0 : index
    %c0_11 = arith.constant 0 : index
    %24 = vector.load %arg1[%c0_9, %c0_10, %c0_11] : memref<1x32x290xf32, #tpu.memory_space<vmem>>, vector<1x32x290xf32>
    %25 = vector.shape_cast %24 : vector<1x32x290xf32> to vector<32x290xf32>
    %26 = vector.extract_strided_slice %25 {offsets = [0, 0], sizes = [32, 256], strides = [1, 1]} : vector<32x290xf32> to vector<32x256xf32>
    %cst = arith.constant 0.000000e+00 : f32
    %27 = vector.broadcast %cst : f32 to vector<32x256xf32>
    %28 = arith.select %18, %26, %27 : vector<32x256xi1>, vector<32x256xf32>
    %29 = vector.extract_strided_slice %25 {offsets = [0, 1], sizes = [32, 256], strides = [1, 1]} : vector<32x290xf32> to vector<32x256xf32>
    %30 = vector.extract_strided_slice %25 {offsets = [0, 2], sizes = [32, 256], strides = [1, 1]} : vector<32x290xf32> to vector<32x256xf32>
    %cst_12 = arith.constant 0.000000e+00 : f32
    %31 = vector.broadcast %cst_12 : f32 to vector<32x256xf32>
    %32 = arith.select %20, %30, %31 : vector<32x256xi1>, vector<32x256xf32>
    %33 = vector.extract_strided_slice %25 {offsets = [0, 16], sizes = [32, 256], strides = [1, 1]} : vector<32x290xf32> to vector<32x256xf32>
    %cst_13 = arith.constant 0.000000e+00 : f32
    %34 = vector.broadcast %cst_13 : f32 to vector<32x256xf32>
    %35 = arith.select %18, %33, %34 : vector<32x256xi1>, vector<32x256xf32>
    %36 = vector.extract_strided_slice %25 {offsets = [0, 17], sizes = [32, 256], strides = [1, 1]} : vector<32x290xf32> to vector<32x256xf32>
    %37 = vector.extract_strided_slice %25 {offsets = [0, 18], sizes = [32, 256], strides = [1, 1]} : vector<32x290xf32> to vector<32x256xf32>
    %cst_14 = arith.constant 0.000000e+00 : f32
    %38 = vector.broadcast %cst_14 : f32 to vector<32x256xf32>
    %39 = arith.select %20, %37, %38 : vector<32x256xi1>, vector<32x256xf32>
    %40 = vector.extract_strided_slice %25 {offsets = [0, 32], sizes = [32, 256], strides = [1, 1]} : vector<32x290xf32> to vector<32x256xf32>
    %cst_15 = arith.constant 0.000000e+00 : f32
    %41 = vector.broadcast %cst_15 : f32 to vector<32x256xf32>
    %42 = arith.select %18, %40, %41 : vector<32x256xi1>, vector<32x256xf32>
    %43 = vector.extract_strided_slice %25 {offsets = [0, 33], sizes = [32, 256], strides = [1, 1]} : vector<32x290xf32> to vector<32x256xf32>
    %44 = vector.extract_strided_slice %25 {offsets = [0, 34], sizes = [32, 256], strides = [1, 1]} : vector<32x290xf32> to vector<32x256xf32>
    %cst_16 = arith.constant 0.000000e+00 : f32
    %45 = vector.broadcast %cst_16 : f32 to vector<32x256xf32>
    %46 = arith.select %20, %44, %45 : vector<32x256xi1>, vector<32x256xf32>
    %47 = tpu.concatenate %28, %29, %32, %35, %36, %39, %42, %43, %46 in 0 : vector<32x256xf32>, vector<32x256xf32>, vector<32x256xf32>, vector<32x256xf32>, vector<32x256xf32>, vector<32x256xf32>, vector<32x256xf32>, vector<32x256xf32>, vector<32x256xf32> -> vector<288x256xf32>
    %cst_17 = arith.constant dense<0.000000e+00> : vector<64x256xf32>
    %48 = tpu.matmul %21, %47, %cst_17 {dimension_numbers = #tpu.dot_dimension_numbers<[1], [0], [0], [1], [0, 0, 1, 1], [], []>} : vector<64x288xf32>, vector<288x256xf32>, vector<64x256xf32> -> vector<64x256xf32>
    %49 = vector.broadcast %23 : vector<64x1xf32> to vector<64x256xf32>
    %50 = arith.addf %48, %49 : vector<64x256xf32>
    %cst_18 = arith.constant 0.000000e+00 : f32
    %51 = vector.broadcast %cst_18 : f32 to vector<64x256xf32>
    %52 = arith.subf %51, %50 : vector<64x256xf32>
    %53 = math.exp %52 : vector<64x256xf32>
    %cst_19 = arith.constant 1.000000e+00 : f32
    %54 = vector.broadcast %cst_19 : f32 to vector<64x256xf32>
    %55 = arith.addf %54, %53 : vector<64x256xf32>
    %56 = tpu.reciprocal %55 {approx = true} : vector<64x256xf32> -> vector<64x256xf32>
    %57 = arith.mulf %50, %56 : vector<64x256xf32>
    %cst_20 = arith.constant dense<0.000000e+00> : vector<32x256xf32>
    %58 = tpu.matmul %22, %57, %cst_20 {dimension_numbers = #tpu.dot_dimension_numbers<[1], [0], [0], [1], [0, 0, 1, 1], [], []>} : vector<32x64xf32>, vector<64x256xf32>, vector<32x256xf32> -> vector<32x256xf32>
    %c0_21 = arith.constant 0 : index
    %c0_22 = arith.constant 0 : index
    %c0_23 = arith.constant 0 : index
    %59 = vector.load %arg5[%c0_21, %c0_22, %c0_23] : memref<1x32x256xf32, #tpu.memory_space<vmem>>, vector<1x32x256xf32>
    %60 = vector.shape_cast %59 : vector<1x32x256xf32> to vector<32x256xf32>
    %61 = vector.shape_cast %58 : vector<32x256xf32> to vector<1x32x256xf32>
    tpu.vector_store %arg5[%c0_21, %c0_22, %c0_23], %61 {strides = array<i32>} : memref<1x32x256xf32, #tpu.memory_space<vmem>>, vector<1x32x256xf32>,
    return
  }
  func.func @transform_0(%arg0: i32) -> (i32, i32, i32) {
    %c0_i32 = arith.constant 0 : i32
    %c0_i32_0 = arith.constant 0 : i32
    %c0_i32_1 = arith.constant 0 : i32
    return %arg0, %c0_i32, %c0_i32_0 : i32, i32, i32
  }
  func.func @transform_1(%arg0: i32) -> (i32, i32) {
    %c0_i32 = arith.constant 0 : i32
    %c0_i32_0 = arith.constant 0 : i32
    %c0_i32_1 = arith.constant 0 : i32
    return %c0_i32, %c0_i32_0 : i32, i32
  }
  func.func @transform_2(%arg0: i32) -> (i32, i32) {
    %c0_i32 = arith.constant 0 : i32
    %c0_i32_0 = arith.constant 0 : i32
    %c0_i32_1 = arith.constant 0 : i32
    return %c0_i32, %c0_i32_0 : i32, i32
  }
  func.func @transform_3(%arg0: i32) -> (i32, i32) {
    %c0_i32 = arith.constant 0 : i32
    %c0_i32_0 = arith.constant 0 : i32
    %c0_i32_1 = arith.constant 0 : i32
    return %c0_i32, %c0_i32_0 : i32, i32
  }
  func.func @transform_4(%arg0: i32) -> (i32, i32, i32) {
    %c0_i32 = arith.constant 0 : i32
    %c0_i32_0 = arith.constant 0 : i32
    %c0_i32_1 = arith.constant 0 : i32
    return %arg0, %c0_i32, %c0_i32_0 : i32, i32, i32
  }
}

</mosaic_0001>

<bundles_post_ra>
// kernel: mul.8
= control target key start
LH: loop header
LB: loop body
LE: loop exit
PB: predicated region body
PF: predicated region fallthrough
CT: control target
= control target key end

     0   :  { %vm15_vm0 = vcmask 523264   ;;  %s59_s0 = inlined_call_operand.vmem [shape: f32[64,3,3], index: 0, kind: input, shape index: {}]   ;;  %s60_s1 = inlined_call_operand.vmem [shape: f32[64,9], index: 1, kind: output, shape index: {}]  }
   0x1   :  { %v27_v0 = vld [vmem:[%s59_s0 + $0x8] sm:$0xf]  ;;  %v28_v1 = vld [vmem:[%s59_s0 + $0x4] sm:$0xf]  ;;  %v12_v2 = vld [vmem:[%s59_s0] sm:$0xf] }
   0x2   :  { %7 = vst [vmem:[#allocation0] sm:$0xf] %v27_v0 }
   0x3   :  { %11 = vst [vmem:[#allocation0 + $0x10] sm:$0xf] %v28_v1 }
   0x4   :  { %13 = vst [vmem:[#allocation0 + $0x8] sm:$0xf] %v12_v2 }
   0x9   :  { %v23_v3 = vld [vmem:[#allocation0] sm:$0x7]  }
   0xa   :  { %v18_v4 = vld [vmem:[#allocation0 + $0x10] sm:$0x7]   ;;  %30 = vst.msk [vmem:[%s60_s1 + $0x6] sm:$0x7] %vm15_vm0, %v23_v3  }
   0xb   :  { %v14_v5 = vld [vmem:[#allocation0 + $0x8] sm:$0x7]   ;;  %29 = vst.msk [vmem:[%s60_s1 + $0x3] sm:$0x7] %vm15_vm0, %v18_v4  }
   0xc   :  { %16 = vst.msk [vmem:[%s60_s1] sm:$0x7] %vm15_vm0, %v14_v5  }

// kernel: ss2d_forward.1
= control target key start
LH: loop header
LB: loop body
LE: loop exit
PB: predicated region body
PF: predicated region fallthrough
CT: control target
= control target key end

     0   :  { %s1510_s15 = smov 0   ;;  %s2390_s0 = inlined_call_operand.vmem [shape: f32[2,32,290], index: 0, kind: input, shape index: {}]   ;;  %s2391_s1 = inlined_call_operand.vmem [shape: f32[64,288], index: 1, kind: input, shape index: {}]   ;;  %s2392_s2 = inlined_call_operand.vmem [shape: f32[64,1], index: 2, kind: input, shape index: {}]   ;;  %s2393_s3 = inlined_call_operand.vmem [shape: f32[32,64], index: 3, kind: input, shape index: {}]   ;;  %s2394_s4 = inlined_call_operand.vmem [shape: f32[2,32,256], index: 4, kind: output, shape index: {}]  }
   0x1 LB: > { %s1206_s16 = sadd.s32 4294967295, %s1474_s15   ;;  %p1210_p0 = scmp.ge.s32.totalorder %s1474_s15, 1  ;;  %s1474_s15 = sphi %s1510_s15, %s14_s15  }
   0x2   : > { %p162_p1 = scmp.lt.s32.totalorder %s1474_s15, 3 }
   0x4   : > { %p163_p2 = pnand %p1210_p0, %p162_p1 }
   0x5   : > { %p188_p3 = scmp.lt.s32.totalorder (!%p163_p2), %s1206_s16, 1  ;;  %s1476_s21 = smov (!%p163_p2), 112  }
   0x6   : > { %166 = sbr.rel (%p163_p2) target bundleno = 719 (0x2cf), region = 36  ;;  %s1477_s22 = smov (!%p163_p2), 94  }
   0x7   : > { %s1478_s23 = smov (!%p163_p2), 126   ;;  %s1479_s24 = smov (!%p163_p2), 127  }
   0x8   : > { %s1480_s25 = smov (!%p163_p2), 95   ;;  %s1481_s26 = smov (!%p163_p2), 96  }
   0x9   : > { %s1482_s27 = smov (!%p163_p2), 110   ;;  %s1483_s28 = smov (!%p163_p2), 111  }
   0xb   : > { %s2404_s16 = smov (!%p188_p3, %s1206_s16), 1  ;;  %v198_v14 = vlaneseq  ;;  %vm370_vm0 = vcmask 916480   ;;  %vm517_vm2 = vcmask 769024   ;;  %vm321_vm4 = vcmask 1031168   ;;  %v260_v29 = vld [vmem:[%s2392_s2 + $0x18] sm:$0xff] }
   0xc   : > { %s1293_s17 = smul.u32 96, %s2404_s16  ;;  %vm566_vm5 = vcmask 1039360   ;;  %vm648_vm6 = vcmask 777216   ;;  %vm468_vm8 = vcmask 785408   ;;  %vm705_vm10 = vcmask 261120   ;;  %s1288_s29 = sshll.u32 %s2404_s16, 6 }
   0xd   : > { %v1644_v15 = vand.u32 127, %v198_v14  ;;  %vm419_vm11 = vcmask 900096   ;;  %vm607_vm12 = vcmask 908288   ;;  %vm1072_vm13 = vcmask 523264   ;;  %s197_s6 = scalar_lea.vmem %s2394_s4, %s1288_s29 }
   0xe   : > { %s1524_s20 = scalar_lea.vmem %s2390_s0, %s1293_s17 }
   0xf   : > { %v1527_v0 = vld [vmem:[%s1524_s20 + $0x48] sm:$0xff]  ;;  %v1530_v1 = vld [vmem:[%s1524_s20 + $0x30] sm:$0xff]  ;;  %v1542_v3 = vld [vmem:[%s1524_s20 + $0x38] sm:$0xff]  ;;  %v205_v18 = vand.u32 15, %v1644_v15 }
  0x10   : > { %364 = vrot.lane.b32.xlu2 %v1527_v0, %s1476_s21  ;;  %511 = vrot.lane.b32.xlu0 %v1527_v0, %s1477_s22  ;;  %v1539_v2 = vld [vmem:[%s1524_s20 + $0x50] sm:$0xff]  ;;  %v1551_v4 = vld [vmem:[%s1524_s20 + $0x18] sm:$0xff]  ;;  %v1608_v10 = vpack.i.bf16 %v1542_v3, %v1530_v1 }
  0x11   : > { %505 = vrot.lane.b32.xlu1 %v1530_v1, %s1477_s22  ;;  %v1554_v5 = vld [vmem:[%s1524_s20 + $0x20] sm:$0xff]  ;;  %v1563_v6 = vld [vmem:[%s1524_s20 + $0x8] sm:$0xff]  ;;  %v1600_v8 = vpack.i.bf16 %v1539_v2, %v1527_v0  ;;  %v1627_v12 = vld [vmem:[%s1524_s20 + $0x58] sm:$0xff]  ;;  %vm1660_vm1 = vcmp.ge.s32.totalorder %v205_v18, 1  ;;  %vm1697_vm3 = vcmp.lt.s32.totalorder %v205_v18, 15 }
  0x12   : > { %v1566_v7 = vld [vmem:[%s1524_s20] sm:$0xff]  ;;  %v1604_v9 = vpack.i.bf16 %v1554_v5, %v1551_v4  ;;  %v1652_v19 = vld [vmem:[%s1524_s20 + $0x28] sm:$0xff]  ;;  %v1671_v23 = vld [vmem:[%s1524_s20 + $0x10] sm:$0xff] }
  0x13   : > { %v1618_v11 = vpack.i.bf16 %v1563_v6, %v1566_v7  ;;  %v1636_v13 = vld [vmem:[%s1524_s20 + $0x40] sm:$0xff]  ;;  %v1681_v25 = vpack.i.bf16 %v1671_v23, %v1652_v19 }
  0x14   : > { %v1648_v17 = vpack.i.bf16 %v1636_v13, %v1627_v12 }
  0x18   : > { %366 = vrot.lane.b32.xlu2 %v1539_v2, %s1476_s21  ;;  %513 = vrot.lane.b32.xlu0 %v1539_v2, %s1477_s22 }
  0x19   : > { %507 = vrot.lane.b32.xlu1 %v1542_v3, %s1477_s22 }
  0x20   : > { %358 = vrot.lane.b32.xlu2 %v1530_v1, %s1476_s21  ;;  %499 = vrot.lane.b32.xlu0 %v1551_v4, %s1477_s22 }
  0x21   : > { %501 = vrot.lane.b32.xlu1 %v1554_v5, %s1477_s22 }
  0x28   : > { %360 = vrot.lane.b32.xlu0 %v1542_v3, %s1476_s21  ;;  %495 = vrot.lane.b32.xlu2 %v1563_v6, %s1477_s22 }
  0x29   : > { %493 = vrot.lane.b32.xlu1 %v1566_v7, %s1477_s22 }
  0x30   : > { %352 = vrot.lane.b32.xlu0 %v1551_v4, %s1476_s21  ;;  %346 = vrot.lane.b32.xlu2 %v1566_v7, %s1476_s21 }
  0x31   : > { %354 = vrot.lane.b32.xlu1 %v1554_v5, %s1476_s21 }
  0x38   : > { %348 = vrot.lane.b32.xlu0 %v1563_v6, %s1476_s21  ;;  %317 = vrot.lane.b32.xlu2 %v1539_v2, %s1478_s23 }
  0x39   : > { %315 = vrot.lane.b32.xlu1 %v1527_v0, %s1478_s23 }
  0x40   : > { %309 = vrot.lane.b32.xlu0 %v1530_v1, %s1478_s23  ;;  %303 = vrot.lane.b32.xlu2 %v1551_v4, %s1478_s23 }
  0x41   : > { %311 = vrot.lane.b32.xlu1 %v1542_v3, %s1478_s23 }
  0x48   : > { %305 = vrot.lane.b32.xlu0 %v1554_v5, %s1478_s23  ;;  %299 = vrot.lane.b32.xlu2 %v1563_v6, %s1478_s23 }
  0x49   : > { %297 = vrot.lane.b32.xlu1 %v1566_v7, %s1478_s23 }
  0x50   : > { %1312 = vrot.lane.b32.xlu0 %v1600_v8, %s1479_s24  ;;  %1322 = vrot.lane.b32.xlu2 %v1604_v9, %s1479_s24 }
  0x51   : > { %1317 = vrot.lane.b32.xlu1 %v1608_v10, %s1479_s24 }
  0x58   : > { %1327 = vrot.lane.b32.xlu0 %v1618_v11, %s1479_s24  ;;  %1337 = vrot.lane.b32.xlu2 %v1608_v10, %s1480_s25 }
  0x59   : > { %1332 = vrot.lane.b32.xlu1 %v1600_v8, %s1480_s25 }
  0x60   : > { %1342 = vrot.lane.b32.xlu0 %v1604_v9, %s1480_s25  ;;  %1347 = vrot.lane.b32.xlu2 %v1618_v11, %s1480_s25 }
  0x61   : > { %368 = vrot.lane.b32.xlu1 %v1627_v12, %s1476_s21 }
  0x68   : > { %362 = vrot.lane.b32.xlu0 %v1636_v13, %s1476_s21  ;;  %464 = vrot.lane.b32.xlu2 %v1539_v2, %s1481_s26 }
  0x69   : > { %462 = vrot.lane.b32.xlu1 %v1527_v0, %s1481_s26 }
  0x6a   : > { %v365_v16 = vpop.permute.xlu2 %364 }
  0x70   : > { %1352 = vrot.lane.b32.xlu0 %v1648_v17, %s1480_s25  ;;  %456 = vrot.lane.b32.xlu2 %v1530_v1, %s1481_s26 }
  0x71   : > { %356 = vrot.lane.b32.xlu1 %v1652_v19, %s1476_s21 }
  0x72   : > { %v1664_v21 = vpop.permute.xlu2 %366 }
  0x73   : > { %v377_v22 = vsel %vm370_vm0, %v365_v16, %v1664_v21 }
  0x74   : > { %1214 = vmatpush.msk.msra.mxu0 %vm1660_vm1, %v377_v22 }
  0x78   : > { %458 = vrot.lane.b32.xlu0 %v1542_v3, %s1481_s26  ;;  %450 = vrot.lane.b32.xlu2 %v1551_v4, %s1481_s26 }
  0x79   : > { %350 = vrot.lane.b32.xlu1 %v1671_v23, %s1476_s21 }
  0x7a   : > { %v359_v24 = vpop.permute.xlu2 %358 }
  0x80   : > { %452 = vrot.lane.b32.xlu0 %v1554_v5, %s1481_s26  ;;  %319 = vrot.lane.b32.xlu2 %v1627_v12, %s1478_s23 }
  0x81   : > { %1357 = vrot.lane.b32.xlu1 %v1681_v25, %s1480_s25 }
  0x82   : > { %v512_v26 = vpop.permute.xlu0 %511  ;;  %v1689_v27 = vpop.permute.xlu2 %495 }
  0x83   : > { %v506_v28 = vpop.permute.xlu1 %505 }
  0x88   : > { %444 = vrot.lane.b32.xlu0 %v1566_v7, %s1481_s26  ;;  %313 = vrot.lane.b32.xlu2 %v1636_v13, %s1478_s23 }
  0x89   : > { %446 = vrot.lane.b32.xlu1 %v1563_v6, %s1481_s26 }
  0x8a   : > { %v1701_v30 = vpop.permute.xlu0 %513  ;;  %v347_v31 = vpop.permute.xlu2 %346 }
  0x8b   : > { %v1703_v32 = vpop.permute.xlu1 %507  ;;  %v524_v33 = vsel %vm517_vm2, %v512_v26, %v1701_v30 }
  0x8c   : > { %1234 = vmatpush.msk.msra.mxu2 %vm1697_vm3, %v524_v33  ;;  %v522_v34 = vsel %vm517_vm2, %v506_v28, %v1703_v32 }
  0x8e   : > { %1235 = vmatpush.msk.msra.mxu2 %vm1697_vm3, %v522_v34 }
  0x90   : > { %413 = vrot.lane.b32.xlu0 %v1527_v0, %s1482_s27  ;;  %466 = vrot.lane.b32.xlu2 %v1627_v12, %s1481_s26 }
  0x91   : > { %415 = vrot.lane.b32.xlu1 %v1539_v2, %s1482_s27 }
  0x92   : > { %v500_v35 = vpop.permute.xlu0 %499  ;;  %v1719_v36 = vpop.permute.xlu2 %317 }
  0x93   : > { %v1721_v37 = vpop.permute.xlu1 %501 }
  0x94   : > { %v520_v38 = vsel %vm517_vm2, %v500_v35, %v1721_v37 }
  0x95   : > { %1236 = vmatpush.msk.msra.mxu2 %vm1697_vm3, %v520_v38 }
  0x98   : > { %307 = vrot.lane.b32.xlu0 %v1652_v19, %s1478_s23  ;;  %409 = vrot.lane.b32.xlu2 %v1542_v3, %s1482_s27 }
  0x99   : > { %407 = vrot.lane.b32.xlu1 %v1530_v1, %s1482_s27 }
  0x9a   : > { %v1733_v39 = vpop.permute.xlu0 %360  ;;  %v304_v40 = vpop.permute.xlu2 %303 }
  0x9b   : > { %v494_v41 = vpop.permute.xlu1 %493  ;;  %v375_v42 = vsel %vm370_vm0, %v359_v24, %v1733_v39 }
  0x9c   : > { %1215 = vmatpush.msk.msra.mxu0 %vm1660_vm1, %v375_v42  ;;  %v518_v43 = vsel %vm517_vm2, %v494_v41, %v1689_v27 }
  0x9d   : > { %1237 = vmatpush.msk.msra.mxu2 %vm1697_vm3, %v518_v43 }
  0xa0   : > { %460 = vrot.lane.b32.xlu0 %v1636_v13, %s1481_s26  ;;  %401 = vrot.lane.b32.xlu2 %v1551_v4, %s1482_s27 }
  0xa1   : > { %301 = vrot.lane.b32.xlu1 %v1671_v23, %s1478_s23 }
  0xa2   : > { %v353_v44 = vpop.permute.xlu0 %352  ;;  %v1749_v45 = vpop.permute.xlu2 %299 }
  0xa3   : > { %v1751_v46 = vpop.permute.xlu1 %354 }
  0xa4   : > { %v373_v47 = vsel %vm370_vm0, %v353_v44, %v1751_v46 }
  0xa5   : > { %1216 = vmatpush.msk.msra.mxu0 %vm1660_vm1, %v373_v47 }
  0xa8   : > { %403 = vrot.lane.b32.xlu0 %v1554_v5, %s1482_s27  ;;  %395 = vrot.lane.b32.xlu2 %v1566_v7, %s1482_s27 }
  0xa9   : > { %454 = vrot.lane.b32.xlu1 %v1652_v19, %s1481_s26 }
  0xaa   : > { %v1763_v48 = vpop.permute.xlu0 %348  ;;  %v1765_v49 = vpop.permute.xlu2 %1322 }
  0xab   : > { %v316_v50 = vpop.permute.xlu1 %315  ;;  %v371_v51 = vsel %vm370_vm0, %v347_v31, %v1763_v48  ;;  %v1325_v18 = vunpack.i.h.bf16 %v1765_v49  ;;  %v1324_v22 = vunpack.i.l.bf16 %v1765_v49 }
  0xac   : > { %1217 = vmatpush.msk.msra.mxu0 %vm1660_vm1, %v371_v51  ;;  %v328_v52 = vsel %vm321_vm4, %v316_v50, %v1719_v36 }
  0xad   : > { %v569_v31 = vsel %vm566_vm5, %v1324_v22, %v1325_v18 }
  0xae   : > { %1218 = vmatpush.msk.msra.mxu0 %vm1697_vm3, %v328_v52 }
  0xb0   : > { %397 = vrot.lane.b32.xlu0 %v1563_v6, %s1482_s27  ;;  %1362 = vrot.lane.b32.xlu2 %v1648_v17, %s1479_s24 }
  0xb1   : > { %448 = vrot.lane.b32.xlu1 %v1671_v23, %s1481_s26 }
  0xb2   : > { %v310_v53 = vpop.permute.xlu0 %309  ;;  %v1781_v54 = vpop.permute.xlu2 %1337 }
  0xb3   : > { %v1783_v55 = vpop.permute.xlu1 %311  ;;  %v1340_v33 = vunpack.i.h.bf16 %v1781_v54  ;;  %v1339_v34 = vunpack.i.l.bf16 %v1781_v54 }
  0xb4   : > { %v326_v56 = vsel %vm321_vm4, %v310_v53, %v1783_v55 }
  0xb5   : > { %1219 = vmatpush.msk.msra.mxu0 %vm1697_vm3, %v326_v56  ;;  %v653_v50 = vsel %vm648_vm6, %v1339_v34, %v1340_v33 }
  0xb8   : > { %417 = vrot.lane.b32.xlu0 %v1627_v12, %s1482_s27  ;;  %411 = vrot.lane.b32.xlu2 %v1636_v13, %s1482_s27 }
  0xb9   : > { %1367 = vrot.lane.b32.xlu1 %v1600_v8, %s1483_s28 }
  0xba   : > { %v1795_v57 = vpop.permute.xlu0 %305  ;;  %v1797_v58 = vpop.permute.xlu2 %1347 }
  0xbb   : > { %v298_v59 = vpop.permute.xlu1 %297  ;;  %v324_v60 = vsel %vm321_vm4, %v304_v40, %v1795_v57  ;;  %v1350_v51 = vunpack.i.h.bf16 %v1797_v58  ;;  %v1349_v52 = vunpack.i.l.bf16 %v1797_v58  ;;  %v1981_v58 = vld [vmem:[%s2391_s1 + $0x18] sm:$0xff] }
  0xbc   : > { %1220 = vmatpush.msk.msra.mxu0 %vm1697_vm3, %v324_v60  ;;  %v322_v61 = vsel %vm321_vm4, %v298_v59, %v1749_v45 }
  0xbe   : > { %1221 = vmatpush.msk.msra.mxu0 %vm1697_vm3, %v322_v61 }
  0xc0   : > { %1372 = vrot.lane.b32.xlu0 %v1681_v25, %s1479_s24  ;;  %405 = vrot.lane.b32.xlu2 %v1652_v19, %s1482_s27 }
  0xc1   : > { %1377 = vrot.lane.b32.xlu1 %v1608_v10, %s1483_s28 }
  0xc2   : > { %v1813_v62 = vpop.permute.xlu0 %1312  ;;  %v1815_v63 = vpop.permute.xlu2 %464 }
  0xc3   : > { %v1315_v8 = vunpack.i.h.bf16 %v1813_v62  ;;  %v1314_v14 = vunpack.i.l.bf16 %v1813_v62  ;;  %v1819_v16 = vpop.permute.xlu1 %1317 }
  0xc4   : > { %v1320_v24 = vunpack.i.h.bf16 %v1819_v16  ;;  %v1319_v26 = vunpack.i.l.bf16 %v1819_v16  ;;  %v262_v16 = vld [vmem:[%s2392_s2 + $0x28] sm:$0xff] }
  0xc5   : > { %v573_v10 = vsel %vm566_vm5, %v1314_v14, %v1315_v8 }
  0xc6   : > { %738 = vmatpush.msra.mxu0 %v573_v10  ;;  %v571_v28 = vsel %vm566_vm5, %v1319_v26, %v1320_v24 }
  0xc8   : > { %1382 = vrot.lane.b32.xlu0 %v1604_v9, %s1483_s28  ;;  %1387 = vrot.lane.b32.xlu2 %v1618_v11, %s1483_s28  ;;  %v1847_v9 = vadd.s32 128, %v1644_v15 }
  0xc9   : > { %399 = vrot.lane.b32.xlu1 %v1671_v23, %s1482_s27  ;;  %739 = vmatpush.msra.mxu0 %v571_v28 }
  0xca   : > { %v1842_v35 = vpop.permute.xlu0 %1327  ;;  %v1844_v38 = vpop.permute.xlu2 %456  ;;  %v212_v15 = vand.u32 15, %v1847_v9 }
  0xcb   : > { %v1330_v11 = vunpack.i.h.bf16 %v1842_v35  ;;  %v1329_v40 = vunpack.i.l.bf16 %v1842_v35  ;;  %v1333_v41 = vpop.permute.xlu1 %1332  ;;  %740 = vmatpush.msra.mxu0 %v569_v31 }
  0xcc   : > { %v1335_v42 = vunpack.i.h.bf16 %v1333_v41  ;;  %v1334_v43 = vunpack.i.l.bf16 %v1333_v41  ;;  %vm1867_vm7 = vcmp.ge.s32.totalorder %v212_v15, 1  ;;  %vm1918_vm9 = vcmp.lt.s32.totalorder %v212_v15, 15 }
  0xcd   : > { %v567_v44 = vsel %vm566_vm5, %v1329_v40, %v1330_v11  ;;  %v245_v40 = vld [vmem:[%s2391_s1 + $0x80] sm:$0xff] }
  0xce   : > { %741 = vmatpush.msra.mxu0 %v567_v44  ;;  %v655_v47 = vsel %vm648_vm6, %v1334_v43, %v1335_v42 }
  0xcf   : > { %771 = vmatpush.msra.mxu1 %v655_v47 }
  0xd0   : > { %1392 = vrot.lane.b32.xlu0 %v1648_v17, %s1483_s28  ;;  %515 = vrot.lane.b32.xlu2 %v1627_v12, %s1477_s22 }
  0xd1   : > { %1397 = vrot.lane.b32.xlu1 %v1681_v25, %s1483_s28  ;;  %772 = vmatpush.msra.mxu1 %v653_v50 }
  0xd2   : > { %v1865_v53 = vpop.permute.xlu0 %1342  ;;  %v451_v54 = vpop.permute.xlu2 %450  ;;  %1222 = vmatpush.msk.msra.mxu0 %vm1660_vm1, %v1527_v0  ;;  %v649_v0 = vsel %vm648_vm6, %v1349_v52, %v1350_v51 }
  0xd3   : > { %v1345_v12 = vunpack.i.h.bf16 %v1865_v53  ;;  %v1344_v17 = vunpack.i.l.bf16 %v1865_v53  ;;  %v369_v25 = vpop.permute.xlu1 %368 }
  0xd4   : > { %v378_v59 = vsel %vm370_vm0, %v1664_v21, %v369_v25  ;;  %1223 = vmatpush.msk.msra.mxu0 %vm1660_vm1, %v1530_v1 }
  0xd5   : > { %1246 = vmatpush.msk.msra.mxu3 %vm1867_vm7, %v378_v59  ;;  %v651_v60 = vsel %vm648_vm6, %v1344_v17, %v1345_v12 }
  0xd6   : > { %773 = vmatpush.msra.mxu1 %v651_v60  ;;  %1224 = vmatpush.msk.msra.mxu0 %vm1660_vm1, %v1551_v4 }
  0xd8   : > { %509 = vrot.lane.b32.xlu0 %v1636_v13, %s1477_s22  ;;  %497 = vrot.lane.b32.xlu2 %v1671_v23, %s1477_s22 }
  0xd9   : > { %503 = vrot.lane.b32.xlu1 %v1652_v19, %s1477_s22  ;;  %774 = vmatpush.msra.mxu1 %v649_v0  ;;  %v2002_v0 = vld [vmem:[%s2391_s1 + $0x30] sm:$0xff] }
  0xda   : > { %v363_v1 = vpop.permute.xlu0 %362  ;;  %v320_v21 = vpop.permute.xlu2 %319  ;;  %1225 = vmatpush.msk.msra.mxu0 %vm1660_vm1, %v1566_v7 }
  0xdb   : > { %v463_v61 = vpop.permute.xlu1 %462  ;;  %v376_v4 = vsel %vm370_vm0, %v1733_v39, %v363_v1  ;;  %v2007_v1 = vld [vmem:[%s2391_s1 + $0x58] sm:$0xff] }
  0xdc   : > { %1247 = vmatpush.msk.msra.mxu3 %vm1867_vm7, %v376_v4  ;;  %v475_v13 = vsel %vm468_vm8, %v463_v61, %v1815_v63 }
  0xdd   : > { %1226 = vmatpush.msk.msra.mxu1 %vm1660_vm1, %v475_v13 }
  0xe2   : > { %v1353_v19 = vpop.permute.xlu0 %1352  ;;  %v314_v23 = vpop.permute.xlu2 %313 }
  0xe3   : > { %v1355_v14 = vunpack.i.h.bf16 %v1353_v19  ;;  %v1354_v22 = vunpack.i.l.bf16 %v1353_v19  ;;  %v357_v26 = vpop.permute.xlu1 %356 }
  0xe4   : > { %v374_v7 = vsel %vm370_vm0, %v1751_v46, %v357_v26 }
  0xe5   : > { %1248 = vmatpush.msk.msra.mxu3 %vm1867_vm7, %v374_v7  ;;  %v656_v39 = vsel %vm648_vm6, %v1335_v42, %v1354_v22  ;;  %v654_v10 = vsel %vm648_vm6, %v1340_v33, %v1355_v14  ;;  %v1929_v33 = vld [vmem:[%s2391_s1 + $0x10] sm:$0xff]  ;;  %v1484_v22 = vmov 0  }
  0xe6   : > { %894 = vmatpush.msrb.mxu2 %v656_v39  ;;  %v2026_v14 = vld [vmem:[%s2391_s1 + $0x70] sm:$0xff]  ;;  %1402 = vset.pattern.permute.xlu1 %v1484_v22 }
  0xe7   : > { %1238 = vmatmul.msk.f32.vlgmr.msra.gmra.mxu2 %vm705_vm10, %v1929_v33  ;;  %1403 = vset.pattern.permute.xlu2 %v1484_v22 }
  0xe8   : > { %895 = vmatpush.msrb.mxu2 %v654_v10  ;;  %1401 = vset.pattern.permute.xlu0 %v1484_v22 }
  0xe9   : > { %692 = vperm.xlu2 %1403, %v262_v16  }
  0xea   : > { %v1913_v28 = vpop.permute.xlu0 %458  ;;  %v467_v31 = vpop.permute.xlu2 %466 }
  0xeb   : > { %v351_v34 = vpop.permute.xlu1 %350  ;;  %v473_v9 = vsel %vm468_vm8, %v1844_v38, %v1913_v28  ;;  %v329_v38 = vsel %vm321_vm4, %v1719_v36, %v320_v21  ;;  %v1954_v36 = vld [vmem:[%s2391_s1] sm:$0xff]  ;;  %v476_v17 = vsel %vm468_vm8, %v1815_v63, %v467_v31 }
  0xec   : > { %1227 = vmatpush.msk.msra.mxu1 %vm1660_vm1, %v473_v9  ;;  %v372_v46 = vsel %vm370_vm0, %v1763_v48, %v351_v34  ;;  %v327_v48 = vsel %vm321_vm4, %v1783_v55, %v314_v23  ;;  %v1959_v55 = vld [vmem:[%s2391_s1 + $0x28] sm:$0xff]  ;;  %746 = vmatmul.f32.vlgmr.msra.gmra.mxu0 %v1954_v36  ;;  %v1986_v63 = vld [vmem:[%s2391_s1 + $0x40] sm:$0xff] }
  0xed   : > { %1249 = vmatpush.msk.msra.mxu3 %vm1867_vm7, %v372_v46  ;;  %v2021_v23 = vld [vmem:[%s2391_s1 + $0x48] sm:$0xff]  ;;  %v2045_v46 = vld [vmem:[%s2391_s1 + $0x60] sm:$0xff] }
  0xef   : > { %1250 = vmatpush.msk.msra.mxu3 %vm1918_vm9, %v329_v38  ;;  %1239 = vmatmul.msk.f32.gmra.mxu2 %vm705_vm10, %v1959_v55  ;;  %v2050_v38 = vld [vmem:[%s2391_s1 + $0x88] sm:$0xff] }
  0xf1   : > { %1251 = vmatpush.msk.msra.mxu3 %vm1918_vm9, %v327_v48  ;;  %682 = vperm.xlu2 %1403, %v260_v29  }
  0xf2   : > { %v1943_v41 = vpop.permute.xlu0 %452  ;;  %v1945_v42 = vpop.permute.xlu2 %409 }
  0xf3   : > { %v1358_v43 = vpop.permute.xlu1 %1357  ;;  %v471_v44 = vsel %vm468_vm8, %v451_v54, %v1943_v41 }
  0xf4   : > { %v1360_v47 = vunpack.i.h.bf16 %v1358_v43  ;;  %v1359_v50 = vunpack.i.l.bf16 %v1358_v43  ;;  %1228 = vmatpush.msk.msra.mxu1 %vm1660_vm1, %v471_v44  ;;  %749 = vmatmul.f32.gmra.mxu0 %v1981_v58 }
  0xf6   : > { %v652_v15 = vsel %vm648_vm6, %v1345_v12, %v1359_v50  ;;  %v650_v52 = vsel %vm648_vm6, %v1350_v51, %v1360_v47 }
  0xf7   : > { %896 = vmatpush.msrb.mxu2 %v652_v15  ;;  %v2085_v15 = vld [vmem:[%s2391_s1 + $0x78] sm:$0xff] }
  0xf8   : > { %1240 = vmatmul.msk.f32.gmra.mxu2 %vm705_vm10, %v1986_v63 }
  0xf9   : > { %897 = vmatpush.msrb.mxu2 %v650_v52 }
  0xfa   : > { %v445_v53 = vpop.permute.xlu0 %444  ;;  %v402_v54 = vpop.permute.xlu2 %401 }
  0xfb   : > { %v1970_v25 = vpop.permute.xlu1 %446  ;;  %1258 = vmatpush.msk.msrb.mxu2 %vm1867_vm7, %v476_v17 }
  0xfc   : > { %v469_v12 = vsel %vm468_vm8, %v445_v53, %v1970_v25  ;;  %752 = vmatmul.f32.gmra.mxu0 %v2002_v0 }
  0xfd   : > { %1229 = vmatpush.msk.msra.mxu1 %vm1660_vm1, %v469_v12 }
 0x100   : > { %1241 = vmatmul.msk.f32.gmra.mxu2 %vm705_vm10, %v2007_v1 }
 0x102   : > { %v414_v51 = vpop.permute.xlu0 %413  ;;  %v1991_v59 = vpop.permute.xlu2 %395 }
 0x103   : > { %v1993_v20 = vpop.permute.xlu1 %415 }
 0x104   : > { %v426_v60 = vsel %vm419_vm11, %v414_v51, %v1993_v20  ;;  %755 = vmatmul.f32.gmra.mxu0 %v2021_v23  ;;  %v2106_v51 = vld [vmem:[%s2391_s1 + $0x90] sm:$0xff] }
 0x105   : > { %1230 = vmatpush.msk.msra.mxu1 %vm1697_vm3, %v426_v60  ;;  %v2111_v60 = vld [vmem:[%s2391_s1 + $0xb8] sm:$0xff] }
 0x108   : > { %1242 = vmatmul.msk.f32.gmra.mxu2 %vm705_vm10, %v2026_v14 }
 0x10a   : > { %v308_v21 = vpop.permute.xlu0 %307  ;;  %v1363_v61 = vpop.permute.xlu2 %1362 }
 0x10b   : > { %v408_v4 = vpop.permute.xlu1 %407  ;;  %v325_v13 = vsel %vm321_vm4, %v1795_v57, %v308_v21  ;;  %v263_v57 = vld [vmem:[%s2392_s2 + $0x30] sm:$0xff]  ;;  %v1364_v26 = vunpack.i.l.bf16 %v1363_v61  ;;  %v1365_v34 = vunpack.i.h.bf16 %v1363_v61 }
 0x10c   : > { %1252 = vmatpush.msk.msra.mxu3 %vm1918_vm9, %v325_v13  ;;  %v424_v19 = vsel %vm419_vm11, %v408_v4, %v1945_v42  ;;  %697 = vperm.xlu1 %1402, %v263_v57   ;;  %v257_v57 = vld [vmem:[%s2392_s2] sm:$0xff] }
 0x10d   : > { %1231 = vmatpush.msk.msra.mxu1 %vm1697_vm3, %v424_v19  ;;  %758 = vmatmul.f32.gmra.mxu0 %v2045_v46  ;;  %v572_v48 = vsel %vm566_vm5, %v1320_v24, %v1365_v34  ;;  %v258_v24 = vld [vmem:[%s2392_s2 + $0x8] sm:$0xff] }
 0x10e   : > { %667 = vperm.xlu2 %1403, %v257_v57  }
 0x110   : > { %1243 = vmatmul.msk.f32.gmra.mxu2 %vm705_vm10, %v2050_v38 }
 0x112   : > { %v461_v7 = vpop.permute.xlu0 %460  ;;  %v412_v39 = vpop.permute.xlu2 %411 }
 0x113   : > { %v302_v10 = vpop.permute.xlu1 %301  ;;  %v474_v31 = vsel %vm468_vm8, %v1913_v28, %v461_v7  ;;  %v261_v28 = vld [vmem:[%s2392_s2 + $0x20] sm:$0xff] }
 0x114   : > { %v323_v9 = vsel %vm321_vm4, %v1749_v45, %v302_v10  ;;  %1259 = vmatpush.msk.msrb.mxu2 %vm1867_vm7, %v474_v31  ;;  %687 = vperm.xlu1 %1402, %v261_v28   ;;  %v574_v45 = vsel %vm566_vm5, %v1315_v8, %v1364_v26  ;;  %v264_v8 = vld [vmem:[%s2392_s2 + $0x38] sm:$0xff]  ;;  %v425_v26 = vsel %vm419_vm11, %v1945_v42, %v412_v39 }
 0x115   : > { %1253 = vmatpush.msk.msra.mxu3 %vm1918_vm9, %v323_v9  ;;  %702 = vperm.xlu0 %1401, %v264_v8  }
 0x116   : > { %761 = vmatmul.f32.gmra.mxu0 %v2085_v15 }
 0x117   : > { %861 = vmatpush.msra.mxu3 %v574_v45 }
 0x119   : > { %862 = vmatpush.msra.mxu3 %v572_v48 }
 0x11a   : > { %v404_v43 = vpop.permute.xlu0 %403  ;;  %v406_v44 = vpop.permute.xlu2 %405 }
 0x11b   : > { %v455_v47 = vpop.permute.xlu1 %454  ;;  %v422_v50 = vsel %vm419_vm11, %v402_v54, %v404_v43  ;;  %v423_v7 = vsel %vm419_vm11, %v404_v43, %v406_v44 }
 0x11c   : > { %1232 = vmatpush.msk.msra.mxu1 %vm1697_vm3, %v422_v50  ;;  %v472_v62 = vsel %vm468_vm8, %v1943_v41, %v455_v47  ;;  %v2090_v41 = vld [vmem:[%s2391_s1 + $0xa0] sm:$0xff]  ;;  %672 = vperm.xlu1 %1402, %v258_v24  }
 0x11d   : > { %1260 = vmatpush.msk.msrb.mxu2 %vm1867_vm7, %v472_v62 }
 0x11e   : > { %1244 = vmatmul.msk.f32.gmra.mxu2 %vm705_vm10, %v2090_v41  ;;  %764 = vmatmul.f32.gmra.mxu0 %v2106_v51 }
 0x122   : > { %v398_v52 = vpop.permute.xlu0 %397  ;;  %v2095_v53 = vpop.permute.xlu2 %1387 }
 0x123   : > { %v449_v54 = vpop.permute.xlu1 %448  ;;  %v420_v17 = vsel %vm419_vm11, %v1991_v59, %v398_v52  ;;  %v259_v59 = vld [vmem:[%s2392_s2 + $0x10] sm:$0xff]  ;;  %v1390_v43 = vunpack.i.h.bf16 %v2095_v53  ;;  %v1389_v44 = vunpack.i.l.bf16 %v2095_v53 }
 0x124   : > { %1233 = vmatpush.msk.msra.mxu1 %vm1697_vm3, %v420_v17  ;;  %v470_v12 = vsel %vm468_vm8, %v1970_v25, %v449_v54  ;;  %677 = vperm.xlu0 %1401, %v259_v59  }
 0x125   : > { %1261 = vmatpush.msk.msrb.mxu2 %vm1867_vm7, %v470_v12 }
 0x126   : > { %1245 = vmatmul.msk.f32.gmra.mxu2 %vm705_vm10, %v2111_v60 }
 0x12a   : > { %v418_v25 = vpop.permute.xlu0 %417  ;;  %v516_v21 = vpop.permute.xlu2 %515 }
 0x12b   : > { %v1368_v61 = vpop.permute.xlu1 %1367  ;;  %v427_v4 = vsel %vm419_vm11, %v1993_v20, %v418_v25  ;;  %v525_v13 = vsel %vm517_vm2, %v1701_v30, %v516_v21  ;;  %v2140_v30 = vld [vmem:[%s2391_s1 + $0xa8] sm:$0xff]  ;;  %v236_v25 = vld [vmem:[%s2391_s1 + $0x38] sm:$0xff] }
 0x12c   : > { %v1370_v19 = vunpack.i.h.bf16 %v1368_v61  ;;  %v1369_v22 = vunpack.i.l.bf16 %v1368_v61  ;;  %1262 = vmatpush.msk.msrb.mxu2 %vm1918_vm9, %v427_v4  ;;  %1266 = vmatpush.msk.msrb.mxu0 %vm1918_vm9, %v525_v13 }
 0x12d   : > { %767 = vmatmul.f32.gmra.mxu0 %v2140_v30 }
 0x12e   : > { %1263 = vmatpush.msk.msrb.mxu2 %vm1918_vm9, %v425_v26  ;;  %v614_v20 = vsel %vm607_vm12, %v1369_v22, %v1370_v19 }
 0x12f   : > { %783 = vmatpush.msra.mxu1 %v614_v20 }
 0x130   : > { %1264 = vmatpush.msk.msrb.mxu2 %vm1918_vm9, %v423_v7 }
 0x132   : > { %v1373_v42 = vpop.permute.xlu0 %1372  ;;  %v498_v29 = vpop.permute.xlu2 %497 }
 0x133   : > { %v1375_v39 = vunpack.i.h.bf16 %v1373_v42  ;;  %v1374_v10 = vunpack.i.l.bf16 %v1373_v42  ;;  %v1378_v31 = vpop.permute.xlu1 %1377 }
 0x134   : > { %v1380_v34 = vunpack.i.h.bf16 %v1378_v31  ;;  %v1379_v9 = vunpack.i.l.bf16 %v1378_v31 }
 0x135   : > { %v570_v28 = vsel %vm566_vm5, %v1325_v18, %v1374_v10  ;;  %v568_v48 = vsel %vm566_vm5, %v1330_v11, %v1375_v39  ;;  %v608_v11 = vsel %vm607_vm12, %v1389_v44, %v1390_v43 }
 0x136   : > { %863 = vmatpush.msra.mxu3 %v570_v28  ;;  %v612_v45 = vsel %vm607_vm12, %v1379_v9, %v1380_v34 }
 0x137   : > { %784 = vmatpush.msra.mxu1 %v612_v45 }
 0x138   : > { %864 = vmatpush.msra.mxu3 %v568_v48 }
 0x13a   : > { %v1383_v47 = vpop.permute.xlu0 %1382  ;;  %1254 = vmatpush.msk.msra.mxu3 %vm1867_vm7, %v1539_v2  ;;  %v230_v2 = vld [vmem:[%s2391_s1 + $0x8] sm:$0xff] }
 0x13b   : > { %v1385_v49 = vunpack.i.h.bf16 %v1383_v47  ;;  %v1384_v18 = vunpack.i.l.bf16 %v1383_v47  ;;  %v400_v50 = vpop.permute.xlu1 %399 }
 0x13c   : > { %v421_v62 = vsel %vm419_vm11, %v398_v52, %v400_v50  ;;  %1255 = vmatpush.msk.msra.mxu3 %vm1867_vm7, %v1542_v3 }
 0x13d   : > { %1265 = vmatpush.msk.msrb.mxu2 %vm1918_vm9, %v421_v62  ;;  %v610_v35 = vsel %vm607_vm12, %v1384_v18, %v1385_v49 }
 0x13e   : > { %785 = vmatpush.msra.mxu1 %v610_v35  ;;  %1256 = vmatpush.msk.msra.mxu3 %vm1867_vm7, %v1554_v5  ;;  %v233_v5 = vld [vmem:[%s2391_s1 + $0x20] sm:$0xff] }
 0x140   : > { %786 = vmatpush.msra.mxu1 %v608_v11  ;;  %1257 = vmatpush.msk.msra.mxu3 %vm1867_vm7, %v1563_v6 }
 0x141   : > { %787 = vmatmul.f32.vlgmr.msra.gmra.mxu1 %v230_v2  ;;  %869 = vmatmul.f32.vlgmr.msra.gmra.mxu3 %v1954_v36 }
 0x142   : > { %1289 = vmatpush.msk.msrb.mxu1 %vm1918_vm9, %v525_v13  ;;  %v1393_v3 = vpop.permute.xlu0 %1392 }
 0x143   : > { %v1395_v8 = vunpack.i.h.bf16 %v1393_v3  ;;  %v1394_v16 = vunpack.i.l.bf16 %v1393_v3  ;;  %v1398_v24 = vpop.permute.xlu1 %1397 }
 0x144   : > { %v1399_v52 = vunpack.i.l.bf16 %v1398_v24  ;;  %v1400_v56 = vunpack.i.h.bf16 %v1398_v24 }
 0x145   : > { %v615_v53 = vsel %vm607_vm12, %v1370_v19, %v1394_v16  ;;  %v613_v6 = vsel %vm607_vm12, %v1380_v34, %v1395_v8 }
 0x146   : > { %906 = vmatpush.msrb.mxu2 %v615_v53  ;;  %v611_v36 = vsel %vm607_vm12, %v1385_v49, %v1399_v52  ;;  %v609_v12 = vsel %vm607_vm12, %v1390_v43, %v1400_v56 }
 0x148   : > { %907 = vmatpush.msrb.mxu2 %v613_v6 }
 0x149   : > { %790 = vmatmul.f32.gmra.mxu1 %v233_v5  ;;  %872 = vmatmul.f32.gmra.mxu3 %v1981_v58 }
 0x14a   : > { %v510_v54 = vpop.permute.xlu0 %509  ;;  %908 = vmatpush.msrb.mxu2 %v611_v36 }
 0x14b   : > { %v504_v17 = vpop.permute.xlu1 %503  ;;  %v523_v59 = vsel %vm517_vm2, %v1703_v32, %v510_v54  ;;  %v519_v32 = vsel %vm517_vm2, %v1689_v27, %v498_v29  ;;  %v239_v27 = vld [vmem:[%s2391_s1 + $0x50] sm:$0xff] }
 0x14c   : > { %909 = vmatpush.msrb.mxu2 %v609_v12  ;;  %1267 = vmatpush.msk.msrb.mxu0 %vm1918_vm9, %v523_v59  ;;  %v521_v58 = vsel %vm517_vm2, %v1721_v37, %v504_v17  ;;  %v242_v37 = vld [vmem:[%s2391_s1 + $0x68] sm:$0xff] }
 0x14d   : > { %1290 = vmatpush.msk.msrb.mxu1 %vm1918_vm9, %v523_v59  ;;  %910 = vmatmul.f32.vlgmr.msrb.gmra.mxu2 %v230_v2 }
 0x14e   : > { %1268 = vmatpush.msk.msrb.mxu0 %vm1918_vm9, %v521_v58 }
 0x14f   : > { %1291 = vmatpush.msk.msrb.mxu1 %vm1918_vm9, %v521_v58 }
 0x150   : > { %1269 = vmatpush.msk.msrb.mxu0 %vm1918_vm9, %v519_v32 }
 0x151   : > { %1292 = vmatpush.msk.msrb.mxu1 %vm1918_vm9, %v519_v32  ;;  %1270 = vmatmul.msk.f32.vlgmr.msrb.gmra.mxu0 %vm705_vm10, %v1929_v33  ;;  %v248_v33 = vld [vmem:[%s2391_s1 + $0x98] sm:$0xff] }
 0x152   : > { %793 = vmatmul.f32.gmra.mxu1 %v236_v25  ;;  %875 = vmatmul.f32.gmra.mxu3 %v2002_v0 }
 0x155   : > { %913 = vmatmul.f32.gmra.mxu2 %v233_v5 }
 0x159   : > { %1271 = vmatmul.msk.f32.gmra.mxu0 %vm705_vm10, %v1959_v55  ;;  %v251_v55 = vld [vmem:[%s2391_s1 + $0xb0] sm:$0xff] }
 0x15a   : > { %796 = vmatmul.f32.gmra.mxu1 %v239_v27  ;;  %878 = vmatmul.f32.gmra.mxu3 %v2021_v23 }
 0x15d   : > { %916 = vmatmul.f32.gmra.mxu2 %v236_v25 }
 0x161   : > { %1272 = vmatmul.msk.f32.gmra.mxu0 %vm705_vm10, %v1986_v63 }
 0x162   : > { %799 = vmatmul.f32.gmra.mxu1 %v242_v37  ;;  %881 = vmatmul.f32.gmra.mxu3 %v2045_v46 }
 0x165   : > { %919 = vmatmul.f32.gmra.mxu2 %v239_v27 }
 0x169   : > { %1273 = vmatmul.msk.f32.gmra.mxu0 %vm705_vm10, %v2007_v1  ;;  %v747_v63 = vpop.f32.mrf.mxu0 }
 0x16a   : > { %802 = vmatmul.f32.gmra.mxu1 %v245_v40  ;;  %884 = vmatmul.f32.gmra.mxu3 %v2085_v15  ;;  %v2243_v0 = vpop.f32.mrf.mxu2 }
 0x16d   : > { %922 = vmatmul.f32.gmra.mxu2 %v242_v37 }
 0x171   : > { %1274 = vmatmul.msk.f32.gmra.mxu0 %vm705_vm10, %v2026_v14  ;;  %v750_v1 = vpop.f32.mrf.mxu0 }
 0x172   : > { %805 = vmatmul.f32.gmra.mxu1 %v248_v33  ;;  %887 = vmatmul.f32.gmra.mxu3 %v2106_v51  ;;  %v2249_v23 = vpop.f32.mrf.mxu2  ;;  %v2251_v51 = vpop.permute.xlu2 %692 }
 0x175   : > { %925 = vmatmul.f32.gmra.mxu2 %v245_v40 }
 0x179   : > { %1275 = vmatmul.msk.f32.gmra.mxu0 %vm705_vm10, %v2050_v38  ;;  %v753_v14 = vpop.f32.mrf.mxu0 }
 0x17a   : > { %808 = vmatmul.f32.gmra.mxu1 %v251_v55  ;;  %890 = vmatmul.f32.gmra.mxu3 %v2140_v30  ;;  %v2253_v4 = vpop.permute.xlu2 %682 }
 0x17b   : > { %v835_v46 = vpop.f32.mrf.mxu2 }
 0x17d   : > { %928 = vmatmul.f32.gmra.mxu2 %v248_v33 }
 0x17e   : > { %v698_v49 = vpop.permute.xlu1 %697 }
 0x181   : > { %v756_v38 = vpop.f32.mrf.mxu0 }
 0x182   : > { %1276 = vmatmul.msk.f32.vlgmr.msrb.gmra.mxu1 %vm705_vm10, %v2090_v41  ;;  %v668_v41 = vpop.permute.xlu2 %667  ;;  %v757_v12 = vadd.f32 %v756_v38, %v2253_v4 }
 0x183   : > { %v838_v15 = vpop.f32.mrf.mxu2  ;;  %v748_v26 = vadd.f32 %v747_v63, %v668_v41 }
 0x185   : > { %931 = vmatmul.f32.gmra.mxu2 %v251_v55 }
 0x186   : > { %v688_v3 = vpop.permute.xlu1 %687 }
 0x187   : > { %v2267_v50 = vpop.permute.xlu0 %702 }
 0x18a   : > { %1277 = vmatmul.msk.f32.gmra.mxu1 %vm705_vm10, %v2111_v60  ;;  %v759_v21 = vpop.f32.mrf.mxu0 }
 0x18b   : > { %v841_v61 = vpop.f32.mrf.mxu2  ;;  %v760_v56 = vadd.f32 %v759_v21, %v688_v3 }
 0x18e   : > { %v673_v58 = vpop.permute.xlu1 %672 }
 0x18f   : > { %v751_v55 = vadd.f32 %v750_v1, %v673_v58 }
 0x193   : > { %v762_v13 = vpop.f32.mrf.mxu0  ;;  %v844_v19 = vpop.f32.mrf.mxu2 }
 0x194   : > { %v763_v53 = vadd.f32 %v762_v13, %v2251_v51 }
 0x196   : > { %v2273_v16 = vpop.permute.xlu0 %677 }
 0x197   : > { %v754_v52 = vadd.f32 %v753_v14, %v2273_v16 }
 0x19b   : > { %v765_v22 = vpop.f32.mrf.mxu0 }
 0x19c   : > { %v766_v36 = vadd.f32 %v765_v22, %v698_v49 }
 0x1a1   : > { %v847_v57 = vpop.f32.mrf.mxu2 }
 0x1a9   : > { %v850_v39 = vpop.f32.mrf.mxu2 }
 0x1aa   : > { %v768_v20 = vpop.f32.mrf.mxu0 }
 0x1be   : > { %v788_v30 = vpop.f32.mrf.mxu1 }
 0x1bf   : > { %v789_v60 = vadd.f32 %v788_v30, %v748_v26 }
 0x1c4   : > { %v870_v7 = vpop.f32.mrf.mxu3 }
 0x1c5   : > { %v871_v31 = vadd.f32 %v870_v7, %v668_v41  ;;  %v769_v41 = vadd.f32 %v768_v20, %v2267_v50 }
 0x1c6   : > { %v791_v42 = vpop.f32.mrf.mxu1 }
 0x1c7   : > { %v792_v21 = vadd.f32 %v791_v42, %v751_v55 }
 0x1c9   : > { %v2298_v7 = vadd.f32 %v2249_v23, %v792_v21 }
 0x1cc   : > { %v2255_v10 = vpop.f32.mrf.mxu3 }
 0x1ce   : > { %v2257_v34 = vpop.f32.mrf.mxu0 }
 0x1cf   : > { %v794_v9 = vpop.f32.mrf.mxu1 }
 0x1d0   : > { %v911_v28 = vpop.f32.mrf.mxu2  ;;  %v795_v6 = vadd.f32 %v794_v9, %v754_v52  ;;  %v978_v52 = vsub.f32 0.0, %v2298_v7 }
 0x1d1   : > { %v2259_v45 = vadd.f32 %v911_v28, %v871_v31 }
 0x1d2   : > { %v2282_v27 = vadd.f32 %v835_v46, %v795_v6 }
 0x1d4   : > { %v980_v38 = vsub.f32 0.0, %v2282_v27 }
 0x1d5   : > { %v2261_v48 = vpop.f32.mrf.mxu3 }
 0x1d6   : > { %v2265_v47 = vpop.f32.mrf.mxu0  ;;  %v1000_v42 = vmul.f32 1.442695, %v980_v38 }
 0x1d7   : > { %v797_v43 = vpop.f32.mrf.mxu1 }
 0x1d8   : > { %v2263_v44 = vpop.f32.mrf.mxu2  ;;  %v798_v37 = vadd.f32 %v797_v43, %v757_v12 }
 0x1da   : > { %v2292_v13 = vadd.f32 %v838_v15, %v798_v37  ;;  %v2302_v15 = vadd.f32 %v2243_v0, %v789_v60 }
 0x1dc   : > { %v982_v31 = vsub.f32 0.0, %v2292_v13 }
 0x1dd   : > { %v879_v18 = vpop.f32.mrf.mxu3 }
 0x1de   : > { %v2271_v11 = vpop.f32.mrf.mxu0  ;;  %v1004_v23 = vmul.f32 1.442695, %v982_v31  ;;  %v880_v60 = vadd.f32 %v879_v18, %v2253_v4 }
 0x1df   : > { %v800_v62 = vpop.f32.mrf.mxu1 }
 0x1e0   : > { %v2269_v35 = vpop.f32.mrf.mxu2  ;;  %v801_v59 = vadd.f32 %v800_v62, %v760_v56  ;;  %v976_v56 = vsub.f32 0.0, %v2302_v15 }
 0x1e2   : > { %v2288_v63 = vadd.f32 %v841_v61, %v801_v59  ;;  %v992_v12 = vmul.f32 1.442695, %v976_v56  ;;  %v874_v59 = vadd.f32 %v2255_v10, %v673_v58 }
 0x1e5   : > { %v882_v2 = vpop.f32.mrf.mxu3 }
 0x1e6   : > { %v2279_v5 = vpop.f32.mrf.mxu0  ;;  %v883_v62 = vadd.f32 %v882_v2, %v688_v3 }
 0x1e7   : > { %v803_v8 = vpop.f32.mrf.mxu1 }
 0x1e8   : > { %v2275_v24 = vpop.f32.mrf.mxu2  ;;  %v804_v54 = vadd.f32 %v803_v8, %v763_v53 }
 0x1e9   : > { %v921_v4 = vadd.f32 %v2275_v24, %v880_v60  ;;  %v915_v24 = vadd.f32 %v2263_v44, %v874_v59 }
 0x1ea   : > { %v2284_v40 = vadd.f32 %v844_v19, %v804_v54  ;;  %v984_v19 = vsub.f32 0.0, %v2288_v63  ;;  %v996_v54 = vmul.f32 1.442695, %v978_v52 }
 0x1ec   : > { %v986_v46 = vsub.f32 0.0, %v2284_v40  ;;  %v1008_v28 = vmul.f32 1.442695, %v984_v19  ;;  %v2326_v19 = vadd.f32 %v2279_v5, %v921_v4  ;;  %v2334_v5 = vadd.f32 %v2265_v47, %v915_v24 }
 0x1ed   : > { %v885_v17 = vpop.f32.mrf.mxu3 }
 0x1ee   : > { %v964_v22 = vpop.f32.mrf.mxu0  ;;  %v1012_v20 = vmul.f32 1.442695, %v986_v46  ;;  %v886_v43 = vadd.f32 %v885_v17, %v2251_v51  ;;  %v877_v17 = vadd.f32 %v2261_v48, %v2273_v16 }
 0x1ef   : > { %v806_v29 = vpop.f32.mrf.mxu1 }
 0x1f0   : > { %v807_v32 = vadd.f32 %v806_v29, %v766_v36  ;;  %v923_v25 = vpop.f32.mrf.mxu2  ;;  %v918_v48 = vadd.f32 %v2269_v35, %v877_v17 }
 0x1f1   : > { %v924_v36 = vadd.f32 %v923_v25, %v883_v62 }
 0x1f2   : > { %v2286_v33 = vadd.f32 %v847_v57, %v807_v32 }
 0x1f4   : > { %v988_v14 = vsub.f32 0.0, %v2286_v33 }
 0x1f5   : > { %v888_v61 = vpop.f32.mrf.mxu3 }
 0x1f6   : > { %v1016_v26 = vmul.f32 1.442695, %v988_v14  ;;  %v889_v53 = vadd.f32 %v888_v61, %v698_v49  ;;  %v967_v51 = vpop.f32.mrf.mxu0  ;;  %v2319_v14 = vadd.f32 %v964_v22, %v924_v36  ;;  %v2331_v61 = vadd.f32 %v2271_v11, %v918_v48 }
 0x1f7   : > { %v809_v57 = vpop.f32.mrf.mxu1 }
 0x1f8   : > { %v810_v30 = vadd.f32 %v809_v57, %v769_v41  ;;  %v926_v1 = vpop.f32.mrf.mxu2  ;;  %1404 = vpow2.f32 %v1016_v26  ;;  %v985_v35 = vsub.f32 0.0, %v2319_v14  ;;  %v981_v52 = vsub.f32 0.0, %v2331_v61 }
 0x1f9   : > { %1406 = vpow2.f32 %v1000_v42 }
 0x1fa   : > { %v2304_v9 = vadd.f32 %v850_v39, %v810_v30  ;;  %1408 = vpow2.f32 %v1012_v20  ;;  %v927_v39 = vadd.f32 %v926_v1, %v886_v43  ;;  %v983_v20 = vsub.f32 0.0, %v2326_v19 }
 0x1fb   : > { %1410 = vpow2.f32 %v1008_v28  ;;  %v1010_v11 = vmul.f32 1.442695, %v985_v35 }
 0x1fc   : > { %v990_v8 = vsub.f32 0.0, %v2304_v9  ;;  %v2315_v18 = vadd.f32 %v967_v51, %v927_v39  ;;  %v1006_v60 = vmul.f32 1.442695, %v983_v20 }
 0x1fd   : > { %v891_v29 = vpop.f32.mrf.mxu3 }
 0x1fe   : > { %v1020_v0 = vmul.f32 1.442695, %v990_v8  ;;  %v1405_v3 = vpop.eup %1404  ;;  %v892_v10 = vadd.f32 %v891_v29, %v2267_v50  ;;  %v987_v26 = vsub.f32 0.0, %v2315_v18  ;;  %v2341_v8 = vadd.f32 %v2257_v34, %v2259_v45 }
 0x1ff   : > { %v970_v6 = vpop.f32.mrf.mxu1  ;;  %v1407_v32 = vpop.eup %1406  ;;  %v1036_v55 = vadd.f32 1.0, %v1405_v3 }
 0x200   : > { %1412 = vpow2.f32 %v1020_v0  ;;  %v929_v2 = vpop.f32.mrf.mxu2  ;;  %v1409_v37 = vpop.eup %1408  ;;  %v1028_v38 = vadd.f32 1.0, %v1407_v32  ;;  %v1014_v28 = vmul.f32 1.442695, %v987_v26  ;;  %v979_v0 = vsub.f32 0.0, %v2334_v5 }
 0x201   : > { %1414 = vpow2.f32 %v1004_v23  ;;  %v930_v49 = vadd.f32 %v929_v2, %v889_v53  ;;  %v1411_v21 = vpop.eup %1410  ;;  %v1034_v46 = vadd.f32 1.0, %v1409_v37  ;;  %v977_v34 = vsub.f32 0.0, %v2341_v8 }
 0x202   : > { %1416 = vpow2.f32 %v996_v54  ;;  %v1032_v50 = vadd.f32 1.0, %v1411_v21  ;;  %v1002_v2 = vmul.f32 1.442695, %v981_v52 }
 0x203   : > { %v2317_v25 = vadd.f32 %v970_v6, %v930_v49  ;;  %1418 = vpow2.f32 %v992_v12  ;;  %v998_v49 = vmul.f32 1.442695, %v979_v0  ;;  %v994_v59 = vmul.f32 1.442695, %v977_v34 }
 0x204   : > { %1420 = vrcp.f32 %v1036_v55 }
 0x205   : > { %v989_v16 = vsub.f32 0.0, %v2317_v25 }
 0x206   : > { %v1413_v58 = vpop.eup %1412 }
 0x207   : > { %v1415_v41 = vpop.eup %1414  ;;  %v1038_v22 = vadd.f32 1.0, %v1413_v58  ;;  %v1018_v57 = vmul.f32 1.442695, %v989_v16  ;;  %v973_v1 = vpop.f32.mrf.mxu1 }
 0x208   : > { %v932_v30 = vpop.f32.mrf.mxu2  ;;  %v1030_v42 = vadd.f32 1.0, %v1415_v41  ;;  %v1417_v31 = vpop.eup %1416 }
 0x209   : > { %1422 = vrcp.f32 %v1038_v22  ;;  %v933_v44 = vadd.f32 %v932_v30, %v892_v10  ;;  %v1419_v62 = vpop.eup %1418  ;;  %v1026_v53 = vadd.f32 1.0, %v1417_v31 }
 0x20a   : > { %1424 = vrcp.f32 %v1028_v38  ;;  %v1421_v23 = vpop.eup %1420  ;;  %v1024_v36 = vadd.f32 1.0, %v1419_v62 }
 0x20b   : > { %1426 = vrcp.f32 %v1034_v46  ;;  %v2337_v43 = vadd.f32 %v973_v1, %v933_v44  ;;  %v1068_v54 = vmul.f32 %v1421_v23, %v2286_v33 }
 0x20c   : > { %1428 = vpow2.f32 %v1018_v57 }
 0x20d   : > { %1430 = vrcp.f32 %v1032_v50  ;;  %v991_v47 = vsub.f32 0.0, %v2337_v43 }
 0x20e   : > { %1432 = vrcp.f32 %v1030_v42 }
 0x20f   : > { %v1423_v56 = vpop.eup %1422  ;;  %1434 = vpow2.f32 %v1014_v28  ;;  %v1022_v39 = vmul.f32 1.442695, %v991_v47  ;;  %v255_v47 = vld [vmem:[%s2393_s3 + $0x10] sm:$0xff] }
 0x210   : > { %v1425_v6 = vpop.eup %1424  ;;  %1436 = vpow2.f32 %v1010_v11  ;;  %v1070_v45 = vmul.f32 %v1423_v56, %v2304_v9 }
 0x211   : > { %v1427_v51 = vpop.eup %1426  ;;  %1438 = vpow2.f32 %v1022_v39  ;;  %v1060_v38 = vmul.f32 %v1425_v6, %v2282_v27  ;;  %v253_v27 = vld [vmem:[%s2393_s3] sm:$0xff] }
 0x212   : > { %v1429_v3 = vpop.eup %1428  ;;  %1440 = vrcp.f32 %v1026_v53  ;;  %1093 = vmatpush.msra.mxu1 %v1070_v45  ;;  %v1066_v29 = vmul.f32 %v1427_v51, %v2284_v40 }
 0x213   : > { %v1431_v17 = vpop.eup %1430  ;;  %1442 = vpow2.f32 %v1006_v60  ;;  %v1037_v9 = vadd.f32 1.0, %v1429_v3 }
 0x214   : > { %v1433_v12 = vpop.eup %1432  ;;  %1444 = vrcp.f32 %v1024_v36  ;;  %1094 = vmatpush.msra.mxu1 %v1068_v54  ;;  %v1064_v37 = vmul.f32 %v1431_v17, %v2288_v63 }
 0x215   : > { %v1435_v32 = vpop.eup %1434  ;;  %1446 = vpow2.f32 %v1002_v2  ;;  %v1062_v16 = vmul.f32 %v1433_v12, %v2292_v13 }
 0x216   : > { %v1437_v4 = vpop.eup %1436  ;;  %1095 = vmatpush.msra.mxu1 %v1066_v29  ;;  %1448 = vpow2.f32 %v998_v49  ;;  %v1035_v33 = vadd.f32 1.0, %v1435_v32 }
 0x217   : > { %v1439_v55 = vpop.eup %1438  ;;  %1450 = vpow2.f32 %v994_v59  ;;  %v1033_v40 = vadd.f32 1.0, %v1437_v4 }
 0x218   : > { %v1441_v21 = vpop.eup %1440  ;;  %v1039_v48 = vadd.f32 1.0, %v1439_v55  ;;  %1096 = vmatpush.msra.mxu1 %v1064_v37  ;;  %1452 = vrcp.f32 %v1037_v9 }
 0x219   : > { %v1443_v10 = vpop.eup %1442  ;;  %v1058_v63 = vmul.f32 %v1441_v21, %v2298_v7 }
 0x21a   : > { %v1445_v58 = vpop.eup %1444  ;;  %1454 = vrcp.f32 %v1039_v48  ;;  %1097 = vmatpush.msra.mxu1 %v1062_v16  ;;  %v1031_v41 = vadd.f32 1.0, %v1443_v10 }
 0x21b   : > { %v1447_v24 = vpop.eup %1446  ;;  %1456 = vrcp.f32 %v1035_v33  ;;  %v1056_v13 = vmul.f32 %v1445_v58, %v2302_v15 }
 0x21c   : > { %1098 = vmatpush.msra.mxu1 %v1060_v38  ;;  %v1449_v46 = vpop.eup %1448  ;;  %v1029_v26 = vadd.f32 1.0, %v1447_v24  ;;  %1458 = vrcp.f32 %v1033_v40 }
 0x21d   : > { %v1451_v22 = vpop.eup %1450  ;;  %v1027_v30 = vadd.f32 1.0, %v1449_v46  ;;  %1460 = vrcp.f32 %v1031_v41 }
 0x21e   : > { %1099 = vmatpush.msra.mxu1 %v1058_v63  ;;  %v1453_v35 = vpop.eup %1452  ;;  %v1025_v50 = vadd.f32 1.0, %v1451_v22  ;;  %1462 = vrcp.f32 %v1029_v26 }
 0x21f   : > { %v1069_v15 = vmul.f32 %v1453_v35, %v2317_v25  ;;  %1464 = vrcp.f32 %v1027_v30 }
 0x220   : > { %v1455_v57 = vpop.eup %1454  ;;  %1100 = vmatpush.msra.mxu1 %v1056_v13  ;;  %1466 = vrcp.f32 %v1025_v50 }
 0x221   : > { %v1071_v1 = vmul.f32 %v1455_v57, %v2337_v43  ;;  %1278 = vmatmul.msk.f32.vlgmr.msra.gmra.mxu1 %vm1072_vm13, %v253_v27  ;;  %v1457_v7 = vpop.eup %1456  ;;  %v254_v43 = vld [vmem:[%s2393_s3 + $0x8] sm:$0xff] }
 0x222   : > { %v1459_v44 = vpop.eup %1458  ;;  %v1067_v42 = vmul.f32 %v1457_v7, %v2315_v18 }
 0x223   : > { %1122 = vmatpush.msrb.mxu3 %v1071_v1  ;;  %v1461_v31 = vpop.eup %1460  ;;  %v1065_v20 = vmul.f32 %v1459_v44, %v2319_v14 }
 0x224   : > { %v1463_v28 = vpop.eup %1462  ;;  %v1063_v62 = vmul.f32 %v1461_v31, %v2326_v19  ;;  %v256_v19 = vld [vmem:[%s2393_s3 + $0x18] sm:$0xff] }
 0x225   : > { %1123 = vmatpush.msrb.mxu3 %v1069_v15  ;;  %v1465_v25 = vpop.eup %1464  ;;  %v1061_v18 = vmul.f32 %v1463_v28, %v2331_v61 }
 0x226   : > { %v1467_v11 = vpop.eup %1466  ;;  %v1059_v52 = vmul.f32 %v1465_v25, %v2334_v5 }
 0x227   : > { %1124 = vmatpush.msrb.mxu3 %v1067_v42  ;;  %v1057_v14 = vmul.f32 %v1467_v11, %v2341_v8 }
 0x229   : > { %1125 = vmatpush.msrb.mxu3 %v1065_v20  ;;  %1279 = vmatmul.msk.f32.gmra.mxu1 %vm1072_vm13, %v254_v43 }
 0x22b   : > { %1126 = vmatpush.msrb.mxu3 %v1063_v62 }
 0x22d   : > { %1127 = vmatpush.msrb.mxu3 %v1061_v18 }
 0x22f   : > { %1128 = vmatpush.msrb.mxu3 %v1059_v52 }
 0x231   : > { %1129 = vmatpush.msrb.mxu3 %v1057_v14  ;;  %1280 = vmatmul.msk.f32.gmra.mxu1 %vm1072_vm13, %v255_v47 }
 0x232   : > { %1282 = vmatmul.msk.f32.vlgmr.msrb.gmra.mxu3 %vm1072_vm13, %v253_v27 }
 0x239   : > { %1281 = vmatmul.msk.f32.gmra.mxu1 %vm1072_vm13, %v256_v19 }
 0x23a   : > { %1283 = vmatmul.msk.f32.gmra.mxu3 %vm1072_vm13, %v254_v43 }
 0x242   : > { %1284 = vmatmul.msk.f32.gmra.mxu3 %vm1072_vm13, %v255_v47 }
 0x24a   : > { %1285 = vmatmul.msk.f32.gmra.mxu3 %vm1072_vm13, %v256_v19 }
 0x29e   : > { %v1102_v61 = vpop.f32.mrf.mxu1 }
 0x29f   : > { %1143 = vst [vmem:[%s197_s6] sm:$0xff] %v1102_v61 }
 0x2a6   : > { %v1105_v5 = vpop.f32.mrf.mxu1 }
 0x2a7   : > { %1145 = vst [vmem:[%s197_s6 + $0x10] sm:$0xff] %v1105_v5 }
 0x2ae   : > { %v1108_v8 = vpop.f32.mrf.mxu1 }
 0x2af   : > { %1147 = vst [vmem:[%s197_s6 + $0x20] sm:$0xff] %v1108_v8 }
 0x2b5   : > { %v1131_v23 = vpop.f32.mrf.mxu3 }
 0x2b6   : > { %1144 = vst [vmem:[%s197_s6 + $0x8] sm:$0xff] %v1131_v23  ;;  %v1111_v53 = vpop.f32.mrf.mxu1 }
 0x2b7   : > { %1149 = vst [vmem:[%s197_s6 + $0x30] sm:$0xff] %v1111_v53 }
 0x2bd   : > { %v1134_v56 = vpop.f32.mrf.mxu3 }
 0x2be   : > { %1146 = vst [vmem:[%s197_s6 + $0x18] sm:$0xff] %v1134_v56 }
 0x2c5   : > { %v1137_v0 = vpop.f32.mrf.mxu3 }
 0x2c6   : > { %1148 = vst [vmem:[%s197_s6 + $0x28] sm:$0xff] %v1137_v0 }
 0x2cd   : > { %v1140_v60 = vpop.f32.mrf.mxu3 }
 0x2ce   : > { %1150 = vst [vmem:[%s197_s6 + $0x38] sm:$0xff] %v1140_v60 }
 0x2cf PF: > { %s14_s15 = sadd.s32 1, %s1474_s15  }
 0x2d0   : > { %p11_p4 = scmp.ge.s32.totalorder %s14_s15, 4  }
 0x2d2   :  { %13 = sbr.rel (!%p11_p4) target bundleno = 1 (0x1), region = 66 }

</bundles_post_ra>
